<compile_context>
chip_gen: v7x
topology: tpu7x:2x2x1
jax: 0.10.0
libtpu: 0.0.40
codegen_flags: <defaults>
</compile_context>

<pallas_src>
import functools

import jax
import jax.numpy as jnp
from jax.experimental import pallas as pl
from jax.experimental.pallas import tpu as pltpu

_LANES = 128
_SUBLANES = 8


def _round_up(v, m):
    return (v + m - 1) // m * m


def _mix_loss_kernel(x_ref, t_ref, out_ref, *,
                     num_classes, rows_per_tile, hw_valid, ragged):
    """Grid = (batch ["parallel"], spatial row tiles ["arbitrary"]).

    x_ref:   (1, C, rows_per_tile, 128) logits block (native dtype).
    t_ref:   (1, 1, rows_per_tile, 128) integer class ids.
    out_ref: (1, 4, 8, 128) f32 per-batch per-lane partial sums (accumulator):
               [0] sum of per-pixel NLL        (cross-entropy numerator)
               [1] sum of logit_ch1 * target   (dice intersection)
               [2] sum of logit_ch1            (dice denominator)
               [3] sum of target               (dice denominator)
    """
    j = pl.program_id(1)
    last_j = pl.num_programs(1) - 1

    @pl.when(j == 0)
    def _():
        out_ref[...] = jnp.zeros_like(out_ref)

    # Dense (rows, 128) = (sublane, lane) layout: every vreg fully occupied,
    # channel reductions below are elementwise vreg-vs-vreg VPU ops.
    xs = [x_ref[0, k].astype(jnp.float32) for k in range(num_classes)]  # C x (R,128)
    ti = t_ref[0, 0].astype(jnp.int32)                                   # (R,128)

    # --- per-pixel cross entropy (stable logsumexp) ---
    m = xs[0]
    for k in range(1, num_classes):
        m = jnp.maximum(m, xs[k])
    s = jnp.zeros_like(m)
    x_tgt = jnp.zeros_like(m)
    for k in range(num_classes):
        s = s + jnp.exp(xs[k] - m)
        x_tgt = x_tgt + jnp.where(ti == k, xs[k], 0.0)   # unrolled target gather
    nll = m + jnp.log(s) - x_tgt                                          # (R,128)

    # --- dice components (raw channel-1 logits, as in the reference) ---
    ch1 = xs[1]
    tf = ti.astype(jnp.float32)

    def fold(v):
        # (R,128) -> (8,128): leading-axis vreg adds, layout-preserving reshape.
        return jnp.sum(v.reshape(rows_per_tile // _SUBLANES, _SUBLANES, _LANES),
                       axis=0)

    def accumulate(nll_v, it_v, i1_v, tf_v):
        out_ref[0, 0] += fold(nll_v)
        out_ref[0, 1] += fold(it_v)
        out_ref[0, 2] += fold(i1_v)
        out_ref[0, 3] += fold(tf_v)

    if ragged:
        # Only the final spatial tile contains out-of-range / padded pixels;
        # interior tiles skip the mask entirely.
        @pl.when(j != last_j)
        def _():
            accumulate(nll, ch1 * tf, ch1, tf)

        @pl.when(j == last_j)
        def _():
            row = jax.lax.broadcasted_iota(jnp.int32, (rows_per_tile, _LANES), 0)
            lane = jax.lax.broadcasted_iota(jnp.int32, (rows_per_tile, _LANES), 1)
            pix = (j * rows_per_tile + row) * _LANES + lane
            valid = pix < hw_valid
            z = jnp.zeros_like(nll)
            # Out-of-range block contents are unspecified -> mask ALL terms.
            accumulate(jnp.where(valid, nll, z),
                       jnp.where(valid, ch1 * tf, z),
                       jnp.where(valid, ch1, z),
                       jnp.where(valid, tf, z))
    else:
        accumulate(nll, ch1 * tf, ch1, tf)


def mix_dice_cross_entropy_loss(x_nchw, target_nhw, alpha, beta, *,
                                tile_bytes_budget=2 << 20):
    n, c, h, w = x_nchw.shape
    assert c >= 2, "dice term reads channel 1; need at least 2 channels"
    hw = h * w
    hw_pad = _round_up(hw, _LANES)
    rows_total = hw_pad // _LANES

    # Free, row-major reshapes only; logits keep their native dtype.
    x = x_nchw.reshape(n, c, hw)
    if not jnp.issubdtype(target_nhw.dtype, jnp.integer):
        target_nhw = target_nhw.astype(jnp.int32)
    t = target_nhw.reshape(n, 1, hw)
    if hw_pad != hw:
        # TODO(synk): avoid this copy when hw % 128 != 0 (un-reshaped fallback
        # path); typical segmentation shapes take the free-reshape path.
        x = jnp.pad(x, ((0, 0), (0, 0), (0, hw_pad - hw)))
        t = jnp.pad(t, ((0, 0), (0, 0), (0, hw_pad - hw)))
    x = x.reshape(n, c, rows_total, _LANES)
    t = t.reshape(n, 1, rows_total, _LANES)

    # VMEM-budget-based tile sizing (multiple of 8 sublane rows).
    x_bytes = jnp.dtype(x.dtype).itemsize
    t_bytes = jnp.dtype(t.dtype).itemsize
    bytes_per_row = _LANES * (c * x_bytes + t_bytes)
    rows_per_tile = max(_SUBLANES,
                        (tile_bytes_budget // bytes_per_row) // _SUBLANES * _SUBLANES)
    rows_per_tile = min(rows_per_tile, _round_up(rows_total, _SUBLANES))
    grid_j = pl.cdiv(rows_total, rows_per_tile)
    ragged = (hw_pad != hw) or (rows_total % rows_per_tile != 0)

    kernel = functools.partial(
        _mix_loss_kernel,
        num_classes=c, rows_per_tile=rows_per_tile,
        hw_valid=hw, ragged=ragged)

    out_bytes = n * 4 * _SUBLANES * _LANES * 4
    cost = pl.CostEstimate(
        flops=int(n * hw * (6 * c + 10)),
        transcendentals=int(n * hw * (c + 1)),
        bytes_accessed=int(x.size * x_bytes + t.size * t_bytes + out_bytes))

    partials = pl.pallas_call(
        kernel,
        out_shape=jax.ShapeDtypeStruct((n, 4, _SUBLANES, _LANES), jnp.float32),
        grid_spec=pltpu.PrefetchScalarGridSpec(
            num_scalar_prefetch=0,
            grid=(n, grid_j),
            in_specs=[
                pl.BlockSpec((1, c, rows_per_tile, _LANES),
                             lambda i, j: (i, 0, j, 0)),   # logits
                pl.BlockSpec((1, 1, rows_per_tile, _LANES),
                             lambda i, j: (i, 0, j, 0)),   # targets
            ],
            out_specs=pl.BlockSpec((1, 4, _SUBLANES, _LANES),
                                   lambda i, j: (i, 0, 0, 0)),
        ),
        compiler_params=pltpu.CompilerParams(
            # Batch axis is independent (per-batch partial outputs) -> sharded
            # across the two v7x TensorCores; spatial axis is the reduction.
            dimension_semantics=("parallel", "arbitrary"),
            vmem_limit_bytes=32 << 20),
        cost_estimate=cost,
    )(x, t)

    # Tiny JAX epilogue: combine per-batch per-lane partials into the loss.
    sums = jnp.sum(partials, axis=(0, 2, 3))              # (4,)
    ce_mean = sums[0] / float(n * hw)
    smooth = 1.0
    dice = 1.0 - (2.0 * sums[1] + smooth) / (sums[2] + sums[3] + smooth)
    return alpha * ce_mean + beta * dice


def _reference(x_nchw, target_nhw, alpha, beta):
    n, c, h, w = x_nchw.shape
    logits = jnp.transpose(x_nchw, (0, 2, 3, 1)).reshape(-1, c).astype(jnp.float32)
    tt = target_nhw.reshape(-1)
    logp = jax.nn.log_softmax(logits, axis=-1)
    ce = -jnp.mean(logp[jnp.arange(tt.shape[0]), tt])
    iflat = x_nchw[:, 1].reshape(-1).astype(jnp.float32)
    tflat = target_nhw.reshape(-1).astype(jnp.float32)
    inter = jnp.sum(iflat * tflat)
    dice = 1.0 - (2.0 * inter + 1.0) / (jnp.sum(iflat) + jnp.sum(tflat) + 1.0)
    return alpha * ce + beta * dice


if __name__ == "__main__":
    # Module has no learnable weights; alpha/beta are deterministic constants.
    alpha, beta = 0.7, 0.3

    key = jax.random.PRNGKey(0)
    kx, kt = jax.random.split(key)
    N, C, H, W = 2, 4, 16, 16
    x = jax.random.normal(kx, (N, C, H, W), dtype=jnp.float32)
    target = jax.random.randint(kt, (N, H, W), 0, C, dtype=jnp.int32)

    loss = mix_dice_cross_entropy_loss(x, target, alpha, beta)
    loss = jax.block_until_ready(loss)

    ref = jax.block_until_ready(_reference(x, target, alpha, beta))
    assert jnp.allclose(loss, ref, atol=1e-5, rtol=1e-4), (loss, ref)

    print("KERNEL_OK")
</pallas_src>

<mosaic_0001>
module attributes {stable_mosaic.version = 11 : i64} {
  func.func @_mix_loss_kernel(%arg0: i32, %arg1: i32, %arg2: memref<1x4x8x128xf32, #tpu.memory_space<vmem>>, %arg3: memref<1x1x8x128xi32, #tpu.memory_space<vmem>>, %arg4: memref<1x4x8x128xf32, #tpu.memory_space<vmem>>) attributes {dimension_semantics = [#tpu.dimension_semantics<parallel>, #tpu.dimension_semantics<arbitrary>], iteration_bounds = array<i64: 2, 1>, scalar_prefetch = 0 : i64, scratch_operands = 0 : i64, tpu.core_type = #tpu.core_type<tc>, window_params = [{transform_indices = @transform_0, window_bounds = array<i64: 1, 4, 8, 128>}, {transform_indices = @transform_1, window_bounds = array<i64: 1, 1, 8, 128>}, {transform_indices = @transform_2, window_bounds = array<i64: 1, 4, 8, 128>}]} {
    %c0_i32 = arith.constant 0 : i32
    %0 = arith.cmpi eq, %arg1, %c0_i32 : i32
    %1 = arith.extui %0 : i1 to i32
    %c0_i32_0 = arith.constant 0 : i32
    %2 = arith.cmpi ne, %1, %c0_i32_0 : i32
    scf.if %2 {
      %cst_27 = arith.constant 0.000000e+00 : f32
      %60 = vector.broadcast %cst_27 : f32 to vector<1x4x8x128xf32>
      %c0_28 = arith.constant 0 : index
      %c0_29 = arith.constant 0 : index
      %c0_30 = arith.constant 0 : index
      %c0_31 = arith.constant 0 : index
      %61 = vector.load %arg4[%c0_28, %c0_29, %c0_30, %c0_31] : memref<1x4x8x128xf32, #tpu.memory_space<vmem>>, vector<1x4x8x128xf32>
      tpu.vector_store %arg4[%c0_28, %c0_29, %c0_30, %c0_31], %60 {strides = array<i32>} : memref<1x4x8x128xf32, #tpu.memory_space<vmem>>, vector<1x4x8x128xf32>,
    } else {
    }
    %c0 = arith.constant 0 : index
    %c0_1 = arith.constant 0 : index
    %c0_2 = arith.constant 0 : index
    %c0_3 = arith.constant 0 : index
    %3 = vector.load %arg2[%c0, %c0_1, %c0_2, %c0_3] : memref<1x4x8x128xf32, #tpu.memory_space<vmem>>, vector<1x1x8x128xf32>
    %4 = vector.shape_cast %3 : vector<1x1x8x128xf32> to vector<8x128xf32>
    %c0_4 = arith.constant 0 : index
    %c1 = arith.constant 1 : index
    %c0_5 = arith.constant 0 : index
    %c0_6 = arith.constant 0 : index
    %5 = vector.load %arg2[%c0_4, %c1, %c0_5, %c0_6] : memref<1x4x8x128xf32, #tpu.memory_space<vmem>>, vector<1x1x8x128xf32>
    %6 = vector.shape_cast %5 : vector<1x1x8x128xf32> to vector<8x128xf32>
    %c0_7 = arith.constant 0 : index
    %c2 = arith.constant 2 : index
    %c0_8 = arith.constant 0 : index
    %c0_9 = arith.constant 0 : index
    %7 = vector.load %arg2[%c0_7, %c2, %c0_8, %c0_9] : memref<1x4x8x128xf32, #tpu.memory_space<vmem>>, vector<1x1x8x128xf32>
    %8 = vector.shape_cast %7 : vector<1x1x8x128xf32> to vector<8x128xf32>
    %c0_10 = arith.constant 0 : index
    %c3 = arith.constant 3 : index
    %c0_11 = arith.constant 0 : index
    %c0_12 = arith.constant 0 : index
    %9 = vector.load %arg2[%c0_10, %c3, %c0_11, %c0_12] : memref<1x4x8x128xf32, #tpu.memory_space<vmem>>, vector<1x1x8x128xf32>
    %10 = vector.shape_cast %9 : vector<1x1x8x128xf32> to vector<8x128xf32>
    %c0_13 = arith.constant 0 : index
    %c0_14 = arith.constant 0 : index
    %c0_15 = arith.constant 0 : index
    %c0_16 = arith.constant 0 : index
    %11 = vector.load %arg3[%c0_13, %c0_14, %c0_15, %c0_16] : memref<1x1x8x128xi32, #tpu.memory_space<vmem>>, vector<1x1x8x128xi32>
    %12 = vector.shape_cast %11 : vector<1x1x8x128xi32> to vector<8x128xi32>
    %13 = arith.maximumf %4, %6 : vector<8x128xf32>
    %14 = arith.maximumf %13, %8 : vector<8x128xf32>
    %15 = arith.maximumf %14, %10 : vector<8x128xf32>
    %cst = arith.constant 0.000000e+00 : f32
    %16 = vector.broadcast %cst : f32 to vector<8x128xf32>
    %cst_17 = arith.constant 0.000000e+00 : f32
    %17 = vector.broadcast %cst_17 : f32 to vector<8x128xf32>
    %18 = arith.subf %4, %15 : vector<8x128xf32>
    %19 = math.exp %18 : vector<8x128xf32>
    %20 = arith.addf %16, %19 : vector<8x128xf32>
    %c0_i32_18 = arith.constant 0 : i32
    %21 = vector.broadcast %c0_i32_18 : i32 to vector<8x128xi32>
    %22 = arith.cmpi eq, %12, %21 : vector<8x128xi32>
    %cst_19 = arith.constant 0.000000e+00 : f32
    %23 = vector.broadcast %cst_19 : f32 to vector<8x128xf32>
    %24 = arith.select %22, %4, %23 : vector<8x128xi1>, vector<8x128xf32>
    %25 = arith.addf %17, %24 : vector<8x128xf32>
    %26 = arith.subf %6, %15 : vector<8x128xf32>
    %27 = math.exp %26 : vector<8x128xf32>
    %28 = arith.addf %20, %27 : vector<8x128xf32>
    %c1_i32 = arith.constant 1 : i32
    %29 = vector.broadcast %c1_i32 : i32 to vector<8x128xi32>
    %30 = arith.cmpi eq, %12, %29 : vector<8x128xi32>
    %cst_20 = arith.constant 0.000000e+00 : f32
    %31 = vector.broadcast %cst_20 : f32 to vector<8x128xf32>
    %32 = arith.select %30, %6, %31 : vector<8x128xi1>, vector<8x128xf32>
    %33 = arith.addf %25, %32 : vector<8x128xf32>
    %34 = arith.subf %8, %15 : vector<8x128xf32>
    %35 = math.exp %34 : vector<8x128xf32>
    %36 = arith.addf %28, %35 : vector<8x128xf32>
    %c2_i32 = arith.constant 2 : i32
    %37 = vector.broadcast %c2_i32 : i32 to vector<8x128xi32>
    %38 = arith.cmpi eq, %12, %37 : vector<8x128xi32>
    %cst_21 = arith.constant 0.000000e+00 : f32
    %39 = vector.broadcast %cst_21 : f32 to vector<8x128xf32>
    %40 = arith.select %38, %8, %39 : vector<8x128xi1>, vector<8x128xf32>
    %41 = arith.addf %33, %40 : vector<8x128xf32>
    %42 = arith.subf %10, %15 : vector<8x128xf32>
    %43 = math.exp %42 : vector<8x128xf32>
    %44 = arith.addf %36, %43 : vector<8x128xf32>
    %c3_i32 = arith.constant 3 : i32
    %45 = vector.broadcast %c3_i32 : i32 to vector<8x128xi32>
    %46 = arith.cmpi eq, %12, %45 : vector<8x128xi32>
    %cst_22 = arith.constant 0.000000e+00 : f32
    %47 = vector.broadcast %cst_22 : f32 to vector<8x128xf32>
    %48 = arith.select %46, %10, %47 : vector<8x128xi1>, vector<8x128xf32>
    %49 = arith.addf %41, %48 : vector<8x128xf32>
    %50 = math.log %44 : vector<8x128xf32>
    %51 = arith.addf %15, %50 : vector<8x128xf32>
    %52 = arith.subf %51, %49 : vector<8x128xf32>
    %53 = arith.sitofp %12 : vector<8x128xi32> to vector<8x128xf32>
    %c0_i32_23 = arith.constant 0 : i32
    %54 = arith.cmpi ne, %arg1, %c0_i32_23 : i32
    %55 = arith.extui %54 : i1 to i32
    %c0_i32_24 = arith.constant 0 : i32
    %56 = arith.cmpi ne, %55, %c0_i32_24 : i32
    scf.if %56 {
      %60 = arith.mulf %6, %53 : vector<8x128xf32>
      %c0_27 = arith.constant 0 : index
      %c0_28 = arith.constant 0 : index
      %c0_29 = arith.constant 0 : index
      %c0_30 = arith.constant 0 : index
      %61 = vector.load %arg4[%c0_27, %c0_28, %c0_29, %c0_30] : memref<1x4x8x128xf32, #tpu.memory_space<vmem>>, vector<1x1x8x128xf32>
      %62 = vector.shape_cast %61 : vector<1x1x8x128xf32> to vector<8x128xf32>
      %63 = vector.shape_cast %52 : vector<8x128xf32> to vector<1x8x128xf32>
      %cst_31 = arith.constant dense<0.000000e+00> : vector<8x128xf32>
      %64 = vector.multi_reduction <add>, %63, %cst_31 [0] : vector<1x8x128xf32> to vector<8x128xf32>
      %65 = arith.addf %62, %64 : vector<8x128xf32>
      %c0_32 = arith.constant 0 : index
      %c0_33 = arith.constant 0 : index
      %c0_34 = arith.constant 0 : index
      %c0_35 = arith.constant 0 : index
      %66 = vector.load %arg4[%c0_32, %c0_33, %c0_34, %c0_35] : memref<1x4x8x128xf32, #tpu.memory_space<vmem>>, vector<1x1x8x128xf32>
      %67 = vector.shape_cast %66 : vector<1x1x8x128xf32> to vector<8x128xf32>
      %68 = vector.shape_cast %65 : vector<8x128xf32> to vector<1x1x8x128xf32>
      tpu.vector_store %arg4[%c0_32, %c0_33, %c0_34, %c0_35], %68 {strides = array<i32>} : memref<1x4x8x128xf32, #tpu.memory_space<vmem>>, vector<1x1x8x128xf32>,
      %c0_36 = arith.constant 0 : index
      %c1_37 = arith.constant 1 : index
      %c0_38 = arith.constant 0 : index
      %c0_39 = arith.constant 0 : index
      %69 = vector.load %arg4[%c0_36, %c1_37, %c0_38, %c0_39] : memref<1x4x8x128xf32, #tpu.memory_space<vmem>>, vector<1x1x8x128xf32>
      %70 = vector.shape_cast %69 : vector<1x1x8x128xf32> to vector<8x128xf32>
      %71 = vector.shape_cast %60 : vector<8x128xf32> to vector<1x8x128xf32>
      %cst_40 = arith.constant dense<0.000000e+00> : vector<8x128xf32>
      %72 = vector.multi_reduction <add>, %71, %cst_40 [0] : vector<1x8x128xf32> to vector<8x128xf32>
      %73 = arith.addf %70, %72 : vector<8x128xf32>
      %c0_41 = arith.constant 0 : index
      %c1_42 = arith.constant 1 : index
      %c0_43 = arith.constant 0 : index
      %c0_44 = arith.constant 0 : index
      %74 = vector.load %arg4[%c0_41, %c1_42, %c0_43, %c0_44] : memref<1x4x8x128xf32, #tpu.memory_space<vmem>>, vector<1x1x8x128xf32>
      %75 = vector.shape_cast %74 : vector<1x1x8x128xf32> to vector<8x128xf32>
      %76 = vector.shape_cast %73 : vector<8x128xf32> to vector<1x1x8x128xf32>
      tpu.vector_store %arg4[%c0_41, %c1_42, %c0_43, %c0_44], %76 {strides = array<i32>} : memref<1x4x8x128xf32, #tpu.memory_space<vmem>>, vector<1x1x8x128xf32>,
      %c0_45 = arith.constant 0 : index
      %c2_46 = arith.constant 2 : index
      %c0_47 = arith.constant 0 : index
      %c0_48 = arith.constant 0 : index
      %77 = vector.load %arg4[%c0_45, %c2_46, %c0_47, %c0_48] : memref<1x4x8x128xf32, #tpu.memory_space<vmem>>, vector<1x1x8x128xf32>
      %78 = vector.shape_cast %77 : vector<1x1x8x128xf32> to vector<8x128xf32>
      %79 = vector.shape_cast %6 : vector<8x128xf32> to vector<1x8x128xf32>
      %cst_49 = arith.constant dense<0.000000e+00> : vector<8x128xf32>
      %80 = vector.multi_reduction <add>, %79, %cst_49 [0] : vector<1x8x128xf32> to vector<8x128xf32>
      %81 = arith.addf %78, %80 : vector<8x128xf32>
      %c0_50 = arith.constant 0 : index
      %c2_51 = arith.constant 2 : index
      %c0_52 = arith.constant 0 : index
      %c0_53 = arith.constant 0 : index
      %82 = vector.load %arg4[%c0_50, %c2_51, %c0_52, %c0_53] : memref<1x4x8x128xf32, #tpu.memory_space<vmem>>, vector<1x1x8x128xf32>
      %83 = vector.shape_cast %82 : vector<1x1x8x128xf32> to vector<8x128xf32>
      %84 = vector.shape_cast %81 : vector<8x128xf32> to vector<1x1x8x128xf32>
      tpu.vector_store %arg4[%c0_50, %c2_51, %c0_52, %c0_53], %84 {strides = array<i32>} : memref<1x4x8x128xf32, #tpu.memory_space<vmem>>, vector<1x1x8x128xf32>,
      %c0_54 = arith.constant 0 : index
      %c3_55 = arith.constant 3 : index
      %c0_56 = arith.constant 0 : index
      %c0_57 = arith.constant 0 : index
      %85 = vector.load %arg4[%c0_54, %c3_55, %c0_56, %c0_57] : memref<1x4x8x128xf32, #tpu.memory_space<vmem>>, vector<1x1x8x128xf32>
      %86 = vector.shape_cast %85 : vector<1x1x8x128xf32> to vector<8x128xf32>
      %87 = vector.shape_cast %53 : vector<8x128xf32> to vector<1x8x128xf32>
      %cst_58 = arith.constant dense<0.000000e+00> : vector<8x128xf32>
      %88 = vector.multi_reduction <add>, %87, %cst_58 [0] : vector<1x8x128xf32> to vector<8x128xf32>
      %89 = arith.addf %86, %88 : vector<8x128xf32>
      %c0_59 = arith.constant 0 : index
      %c3_60 = arith.constant 3 : index
      %c0_61 = arith.constant 0 : index
      %c0_62 = arith.constant 0 : index
      %90 = vector.load %arg4[%c0_59, %c3_60, %c0_61, %c0_62] : memref<1x4x8x128xf32, #tpu.memory_space<vmem>>, vector<1x1x8x128xf32>
      %91 = vector.shape_cast %90 : vector<1x1x8x128xf32> to vector<8x128xf32>
      %92 = vector.shape_cast %89 : vector<8x128xf32> to vector<1x1x8x128xf32>
      tpu.vector_store %arg4[%c0_59, %c3_60, %c0_61, %c0_62], %92 {strides = array<i32>} : memref<1x4x8x128xf32, #tpu.memory_space<vmem>>, vector<1x1x8x128xf32>,
    } else {
    }
    %c0_i32_25 = arith.constant 0 : i32
    %57 = arith.cmpi eq, %arg1, %c0_i32_25 : i32
    %58 = arith.extui %57 : i1 to i32
    %c0_i32_26 = arith.constant 0 : i32
    %59 = arith.cmpi ne, %58, %c0_i32_26 : i32
    scf.if %59 {
      %60 = tpu.iota {dimensions = array<i32: 0>} : vector<8x128xi32>
      %61 = tpu.iota {dimensions = array<i32: 1>} : vector<8x128xi32>
      %c8_i32 = arith.constant 8 : i32
      %62 = arith.muli %arg1, %c8_i32 : i32
      %63 = vector.broadcast %62 : i32 to vector<8x128xi32>
      %64 = arith.addi %63, %60 : vector<8x128xi32>
      %c128_i32 = arith.constant 128 : i32
      %65 = vector.broadcast %c128_i32 : i32 to vector<8x128xi32>
      %66 = arith.muli %64, %65 : vector<8x128xi32>
      %67 = arith.addi %66, %61 : vector<8x128xi32>
      %c256_i32 = arith.constant 256 : i32
      %68 = vector.broadcast %c256_i32 : i32 to vector<8x128xi32>
      %69 = arith.cmpi slt, %67, %68 : vector<8x128xi32>
      %cst_27 = arith.constant 0.000000e+00 : f32
      %70 = vector.broadcast %cst_27 : f32 to vector<8x128xf32>
      %71 = arith.select %69, %52, %70 : vector<8x128xi1>, vector<8x128xf32>
      %72 = arith.mulf %6, %53 : vector<8x128xf32>
      %73 = arith.select %69, %72, %70 : vector<8x128xi1>, vector<8x128xf32>
      %74 = arith.select %69, %6, %70 : vector<8x128xi1>, vector<8x128xf32>
      %75 = arith.select %69, %53, %70 : vector<8x128xi1>, vector<8x128xf32>
      %c0_28 = arith.constant 0 : index
      %c0_29 = arith.constant 0 : index
      %c0_30 = arith.constant 0 : index
      %c0_31 = arith.constant 0 : index
      %76 = vector.load %arg4[%c0_28, %c0_29, %c0_30, %c0_31] : memref<1x4x8x128xf32, #tpu.memory_space<vmem>>, vector<1x1x8x128xf32>
      %77 = vector.shape_cast %76 : vector<1x1x8x128xf32> to vector<8x128xf32>
      %78 = vector.shape_cast %71 : vector<8x128xf32> to vector<1x8x128xf32>
      %cst_32 = arith.constant dense<0.000000e+00> : vector<8x128xf32>
      %79 = vector.multi_reduction <add>, %78, %cst_32 [0] : vector<1x8x128xf32> to vector<8x128xf32>
      %80 = arith.addf %77, %79 : vector<8x128xf32>
      %c0_33 = arith.constant 0 : index
      %c0_34 = arith.constant 0 : index
      %c0_35 = arith.constant 0 : index
      %c0_36 = arith.constant 0 : index
      %81 = vector.load %arg4[%c0_33, %c0_34, %c0_35, %c0_36] : memref<1x4x8x128xf32, #tpu.memory_space<vmem>>, vector<1x1x8x128xf32>
      %82 = vector.shape_cast %81 : vector<1x1x8x128xf32> to vector<8x128xf32>
      %83 = vector.shape_cast %80 : vector<8x128xf32> to vector<1x1x8x128xf32>
      tpu.vector_store %arg4[%c0_33, %c0_34, %c0_35, %c0_36], %83 {strides = array<i32>} : memref<1x4x8x128xf32, #tpu.memory_space<vmem>>, vector<1x1x8x128xf32>,
      %c0_37 = arith.constant 0 : index
      %c1_38 = arith.constant 1 : index
      %c0_39 = arith.constant 0 : index
      %c0_40 = arith.constant 0 : index
      %84 = vector.load %arg4[%c0_37, %c1_38, %c0_39, %c0_40] : memref<1x4x8x128xf32, #tpu.memory_space<vmem>>, vector<1x1x8x128xf32>
      %85 = vector.shape_cast %84 : vector<1x1x8x128xf32> to vector<8x128xf32>
      %86 = vector.shape_cast %73 : vector<8x128xf32> to vector<1x8x128xf32>
      %cst_41 = arith.constant dense<0.000000e+00> : vector<8x128xf32>
      %87 = vector.multi_reduction <add>, %86, %cst_41 [0] : vector<1x8x128xf32> to vector<8x128xf32>
      %88 = arith.addf %85, %87 : vector<8x128xf32>
      %c0_42 = arith.constant 0 : index
      %c1_43 = arith.constant 1 : index
      %c0_44 = arith.constant 0 : index
      %c0_45 = arith.constant 0 : index
      %89 = vector.load %arg4[%c0_42, %c1_43, %c0_44, %c0_45] : memref<1x4x8x128xf32, #tpu.memory_space<vmem>>, vector<1x1x8x128xf32>
      %90 = vector.shape_cast %89 : vector<1x1x8x128xf32> to vector<8x128xf32>
      %91 = vector.shape_cast %88 : vector<8x128xf32> to vector<1x1x8x128xf32>
      tpu.vector_store %arg4[%c0_42, %c1_43, %c0_44, %c0_45], %91 {strides = array<i32>} : memref<1x4x8x128xf32, #tpu.memory_space<vmem>>, vector<1x1x8x128xf32>,
      %c0_46 = arith.constant 0 : index
      %c2_47 = arith.constant 2 : index
      %c0_48 = arith.constant 0 : index
      %c0_49 = arith.constant 0 : index
      %92 = vector.load %arg4[%c0_46, %c2_47, %c0_48, %c0_49] : memref<1x4x8x128xf32, #tpu.memory_space<vmem>>, vector<1x1x8x128xf32>
      %93 = vector.shape_cast %92 : vector<1x1x8x128xf32> to vector<8x128xf32>
      %94 = vector.shape_cast %74 : vector<8x128xf32> to vector<1x8x128xf32>
      %cst_50 = arith.constant dense<0.000000e+00> : vector<8x128xf32>
      %95 = vector.multi_reduction <add>, %94, %cst_50 [0] : vector<1x8x128xf32> to vector<8x128xf32>
      %96 = arith.addf %93, %95 : vector<8x128xf32>
      %c0_51 = arith.constant 0 : index
      %c2_52 = arith.constant 2 : index
      %c0_53 = arith.constant 0 : index
      %c0_54 = arith.constant 0 : index
      %97 = vector.load %arg4[%c0_51, %c2_52, %c0_53, %c0_54] : memref<1x4x8x128xf32, #tpu.memory_space<vmem>>, vector<1x1x8x128xf32>
      %98 = vector.shape_cast %97 : vector<1x1x8x128xf32> to vector<8x128xf32>
      %99 = vector.shape_cast %96 : vector<8x128xf32> to vector<1x1x8x128xf32>
      tpu.vector_store %arg4[%c0_51, %c2_52, %c0_53, %c0_54], %99 {strides = array<i32>} : memref<1x4x8x128xf32, #tpu.memory_space<vmem>>, vector<1x1x8x128xf32>,
      %c0_55 = arith.constant 0 : index
      %c3_56 = arith.constant 3 : index
      %c0_57 = arith.constant 0 : index
      %c0_58 = arith.constant 0 : index
      %100 = vector.load %arg4[%c0_55, %c3_56, %c0_57, %c0_58] : memref<1x4x8x128xf32, #tpu.memory_space<vmem>>, vector<1x1x8x128xf32>
      %101 = vector.shape_cast %100 : vector<1x1x8x128xf32> to vector<8x128xf32>
      %102 = vector.shape_cast %75 : vector<8x128xf32> to vector<1x8x128xf32>
      %cst_59 = arith.constant dense<0.000000e+00> : vector<8x128xf32>
      %103 = vector.multi_reduction <add>, %102, %cst_59 [0] : vector<1x8x128xf32> to vector<8x128xf32>
      %104 = arith.addf %101, %103 : vector<8x128xf32>
      %c0_60 = arith.constant 0 : index
      %c3_61 = arith.constant 3 : index
      %c0_62 = arith.constant 0 : index
      %c0_63 = arith.constant 0 : index
      %105 = vector.load %arg4[%c0_60, %c3_61, %c0_62, %c0_63] : memref<1x4x8x128xf32, #tpu.memory_space<vmem>>, vector<1x1x8x128xf32>
      %106 = vector.shape_cast %105 : vector<1x1x8x128xf32> to vector<8x128xf32>
      %107 = vector.shape_cast %104 : vector<8x128xf32> to vector<1x1x8x128xf32>
      tpu.vector_store %arg4[%c0_60, %c3_61, %c0_62, %c0_63], %107 {strides = array<i32>} : memref<1x4x8x128xf32, #tpu.memory_space<vmem>>, vector<1x1x8x128xf32>,
    } else {
    }
    return
  }
  func.func @transform_0(%arg0: i32, %arg1: i32) -> (i32, i32, i32, i32) {
    %c0_i32 = arith.constant 0 : i32
    %c0_i32_0 = arith.constant 0 : i32
    %c0_i32_1 = arith.constant 0 : i32
    return %arg0, %c0_i32, %arg1, %c0_i32_0 : i32, i32, i32, i32
  }
  func.func @transform_1(%arg0: i32, %arg1: i32) -> (i32, i32, i32, i32) {
    %c0_i32 = arith.constant 0 : i32
    %c0_i32_0 = arith.constant 0 : i32
    %c0_i32_1 = arith.constant 0 : i32
    return %arg0, %c0_i32, %arg1, %c0_i32_0 : i32, i32, i32, i32
  }
  func.func @transform_2(%arg0: i32, %arg1: i32) -> (i32, i32, i32, i32) {
    %c0_i32 = arith.constant 0 : i32
    %c0_i32_0 = arith.constant 0 : i32
    %c0_i32_1 = arith.constant 0 : i32
    %c0_i32_2 = arith.constant 0 : i32
    return %arg0, %c0_i32, %c0_i32_0, %c0_i32_1 : i32, i32, i32, i32
  }
}

</mosaic_0001>

<bundles_post_ra>
// kernel: tpu_custom_call.1
= control target key start
LH: loop header
LB: loop body
LE: loop exit
PB: predicated region body
PF: predicated region fallthrough
CT: control target
= control target key end

     0   :  { %7 = vsyncpa [#allocation3], 0  ;;  %s932_s0 = inlined_call_operand.hbm [shape: f32[2,4,2,128], index: 0, kind: input, shape index: {}]   ;;  %s933_s1 = inlined_call_operand.hbm [shape: s32[2,1,2,128], index: 1, kind: input, shape index: {}]   ;;  %s934_s2 = inlined_call_operand.hbm [shape: f32[2,4,8,128], index: 2, kind: output, shape index: {}]  }
   0x1   :  { %9 = vsyncpa [#allocation3 + $0x1], 0 }
   0x2   :  { %10 = vsyncpa [#allocation6], 0 }
   0x3   :  { %12 = vsyncpa [#allocation6 + $0x1], 0 }
   0x4   :  { %13 = vsyncpa [#allocation4], 0 }
   0x5   :  { %15 = vsyncpa [#allocation4 + $0x1], 0  ;;  %s749_s9 = smov 0   ;;  %s751_s10 = smov 0  }
   0x6   :  { %s753_s11 = smov 0   ;;  %s755_s12 = smov 0  }
   0x7   :  { %s757_s13 = smov 0   ;;  %s759_s14 = smov 0  }
   0x8 LB: > { %s497_s15 = sadd.s32 4294967295, %s721_s14   ;;  %s498_s16 = sadd.s32 4294967294, %s721_s14   ;;  %s721_s14 = sphi %s759_s14, %s21_s14   ;;  %s717_s13 = sphi %s757_s13, %s946_s13   ;;  %s713_s12 = sphi %s755_s12, %s945_s12   ;;  %s709_s11 = sphi %s753_s11, %s944_s11   ;;  %s705_s10 = sphi %s751_s10, %s943_s10   ;;  %s701_s9 = sphi %s749_s9, %s942_s9  }
   0x9   : > { %s33_s17 = sadd.s32 1, %s717_s13  ;;  %s42_s18 = sadd.s32 1, %s709_s11 }
   0xa   : > { %p35_p0 = scmp.ge.s32.totalorder %s33_s17, 2  ;;  %p49_p1 = scmp.ne.s32.totalorder %s709_s11, %s705_s10 }
   0xb   : > { %p50_p2 = scmp.eq.s32.totalorder %s721_s14, 0  ;;  %p55_p3 = scmp.ne.s32.totalorder %s705_s10, %s701_s9 }
   0xc   : > { %s948_s17 = smov (%p35_p0, %s33_s17), 0  ;;  %p56_p5 = scmp.eq.s32.totalorder %s497_s15, 0 }
   0xd   : > { %p790_p4 = por %p50_p2, %p49_p1  ;;  %s37_s20 = ssub.s32 %s717_s13, %s948_s17 }
   0xe   : > { %p107_p6 = scmp.eq.s32.totalorder %s497_s15, 1  ;;  %p40_p7 = scmp.eq.s32.totalorder %s37_s20, 0 }
   0xf   : > { %p796_p8 = por %p56_p5, %p55_p3  ;;  %p113_p10 = scmp.eq.s32.totalorder %s498_s16, 1 }
  0x10   : > { %p800_p9 = por %p107_p6, %p49_p1  ;;  %p935_p12 = scmp.ge.s32.totalorder %s721_s14, 2 }
  0x11   : > { %s805_s23 = scalar_select %p40_p7, %s709_s11, %s42_s18  }
  0x12   : > { %p807_p11 = por %p113_p10, %p55_p3  ;;  %129 = sbr.rel (%p935_p12) target bundleno = 76 (0x4c), region = 16 }
  0x14   : > { %s939_s24 = scalar_select %p807_p11, 1, 0 }
  0x19   : > { %132 = sbr.rel (!%p790_p4) target bundleno = 45 (0x2d), region = 20 }
  0x20   : > { %s133_s25 = sand.u32 1, %s709_s11  }
  0x21   : > { %s501_s26 = sshll.u32 %s133_s25, 5  ;;  %s134_s27 = scalar_lea.sflag [#allocation3], %s133_s25 }
  0x22   : > { %s137_s28 = scalar_lea.vmem [#allocation2], %s501_s26 }
  0x23   : > { %143 = vsyncadd %s134_s27, 384  ;;  %s532_s29 = sshll.u32 %s717_s13, 7  ;;  %s155_s30 = sld [smem:[#allocation0]]  }
  0x24   : > { %s148_s5 = scalar_lea.hbm %s932_s0, %s532_s29  ;;  %s163_s6 = sshll.u32 %s137_s28, 4  ;;  %s164_s6 = int_to_ptr.vmem [resolvable:$true] %s163_s6 }
  0x25   : > { %s723_s7 = smov 32   ;;  %s724_s8 = smov 128  }
  0x26   : > { %170 = sst [smem:[#allocation9]] %s723_s7  ;;  %s725_s15 = smov 1  }
  0x27   : > { %172 = sst [smem:[#allocation9 + $0x1]] %s724_s8  ;;  %s726_s20 = smov 2  }
  0x28   : > { %174 = sst [smem:[#allocation9 + $0x2]] %s725_s15  ;;  %s727_s25 = smov [#allocation8]  }
  0x29   : > { %s504_s16 = sshll.u32 %s155_s30, 26  ;;  %176 = sst [smem:[#allocation9 + $0x3]] %s723_s7 }
  0x2a   : > { %s505_s18 = sadd.s32 134217728, %s504_s16  ;;  %178 = sst [smem:[#allocation9 + $0x4]] %s723_s7 }
  0x2b   : > { %180 = sst [smem:[#allocation9 + $0x5]] %s726_s20 }
  0x2c   : > { %182 = dma.general %s148_s5, 128, %s164_s6, %s134_s27, %s727_s25, [#allocation9], %s505_s18, 0  }
  0x2d PF: > { %185 = sbr.rel (!%p790_p4) target bundleno = 76 (0x4c), region = 24  ;;  %s186_s26 = sand.u32 (%p790_p4), 1, %s709_s11  }
  0x2e   : > { %s506_s28 = sshll.u32 (%p790_p4), %s186_s26, 3  ;;  %s824_s29 = scalar_lea.sflag (%p790_p4), [#allocation6], %s186_s26 }
  0x2f   : > { %s190_s3 = scalar_lea.vmem (%p790_p4), [#allocation5], %s506_s28 }
  0x34   : > { %196 = vsyncadd %s824_s29, 96  ;;  %s507_s30 = sshll.u32 %s717_s13, 5  ;;  %s202_s4 = sshll.u32 %s190_s3, 4  ;;  %s203_s4 = int_to_ptr.vmem [resolvable:$true] %s202_s4 }
  0x35   : > { %s831_s15 = scalar_lea.hbm %s933_s1, %s507_s30  ;;  %s613_s6 = scalar_lea.hbm %s933_s1, 64 }
  0x36   : > { %s611_s19 = scalar_lea.hbm %s831_s15, 32  ;;  %p614_p0 = scmp.lt.u32.totalorder %s831_s15, %s933_s1 }
  0x37   : > { %p612_p13 = scmp.ne.s32.totalorder %s831_s15, %s611_s19  ;;  %p615_p1 = scmp.lt.u32.totalorder %s613_s6, %s611_s19 }
  0x38   : > { %p617_p3 = scmp.lt.u32.totalorder %s611_s19, %s831_s15 }
  0x39   : > { %p616_p2 = por %p615_p1, %p614_p0 }
  0x3b   : > { %p618_p4 = por %p617_p3, %p616_p2 }
  0x3d   : > { %p619_p5 = pnand %p618_p4, %p612_p13 }
  0x3f   : > { %622 = shalt.err (!%p619_p5)
}
  0x40   : > { %s623_s20 = scalar_lea.vmem %s203_s4, 32  ;;  %s728_s25 = smov [#allocation5]  }
  0x41   : > { %p624_p6 = scmp.ne.s32.totalorder %s203_s4, %s623_s20  ;;  %s625_s26 = sshll.u32 %s728_s25, 4  ;;  %s626_s26 = int_to_ptr.vmem [resolvable:$false] %s625_s26 }
  0x42   : > { %s627_s28 = scalar_lea.vmem %s626_s26, 256  ;;  %p628_p7 = scmp.lt.s32.totalorder %s203_s4, %s626_s26 }
  0x43   : > { %p629_p10 = scmp.lt.s32.totalorder %s627_s28, %s623_s20 }
  0x45   : > { %p630_p12 = por %p629_p10, %p628_p7 }
  0x47   : > { %p631_p11 = pnand %p630_p12, %p624_p6 }
  0x49   : > { %634 = shalt.err (!%p631_p11)
}
  0x4a   : > { %s729_s3 = smov 32   ;;  %s730_s30 = smov 2  }
  0x4b   : > { %208 = dma.hbm_to_vmem [thread:$0]  %s831_s15, 32, %s203_s4, %s824_s29, %s729_s3, %s729_s3, %s730_s30  }
  0x4c PF: > { %p508_p13 = scmp.ge.s32.totalorder %s721_s14, 1  ;;  %p210_p0 = scmp.lt.s32.totalorder %s721_s14, 3 }
  0x4e   : > { %p211_p1 = pnand %p508_p13, %p210_p0 }
  0x4f   : > { %s848_s7 = sand.u32 (!%p211_p1), 1, %s705_s10  }
  0x50   : > { %214 = sbr.rel (%p211_p1) target bundleno = 153 (0x99), region = 28  ;;  %s509_s8 = sshll.u32 (!%p211_p1), %s848_s7, 5 }
  0x51   : > { %s217_s19 = scalar_lea.sflag (!%p211_p1), [#allocation3], %s848_s7  ;;  %s220_s27 = scalar_lea.vmem (!%p211_p1), [#allocation2], %s509_s8 }
  0x57   : > { %688 = dma.done.wait (%p796_p8), %s217_s19, 512  }
  0x58   : > { %690 = vsyncadd (%p796_p8), %s217_s19, 4294966784  ;;  %s510_s29 = sshll.u32 %s848_s7, 3  ;;  %s226_s4 = scalar_lea.sflag [#allocation6], %s848_s7 }
  0x59   : > { %s229_s15 = scalar_lea.vmem [#allocation5], %s510_s29 }
  0x5a   : > { %692 = dma.done.wait (%p796_p8), %s226_s4, 128  }
  0x5b   : > { %694 = vsyncadd (%p796_p8), %s226_s4, 4294967168  ;;  %v340_v0 = vlaneseq  ;;  %v269_v5 = vld [vmem:[%s220_s27] sm:$0xff]  ;;  %v512_v6 = vld [vmem:[%s220_s27 + $0x8] sm:$0xff]  ;;  %s868_s21 = scalar_lea.vmem [#allocation7], %s509_s8  ;;  %s533_s5 = sshll.u32 %s713_s12, 9 }
  0x5c   : > { %v513_v7 = vld [vmem:[%s220_s27 + $0x10] sm:$0xff]  ;;  %v277_v8 = vmax.f32 %v269_v5, %v512_v6  ;;  %v514_v9 = vld [vmem:[%s220_s27 + $0x18] sm:$0xff]  ;;  %v276_v10 = vld [vmem:[%s229_s15] sm:$0xff]  ;;  %s388_s6 = sshll.u32 %s868_s21, 4  ;;  %s880_s20 = scalar_lea.hbm %s934_s2, %s533_s5  ;;  %s882_s6 = int_to_ptr.vmem [resolvable:$true] %s388_s6 }
  0x5d   : > { %v341_v1 = vshrl.u32 %v340_v0, 7  ;;  %v343_v2 = vand.u32 127, %v340_v0  ;;  %v312_v12 = vcvt.s32.f32 %v276_v10  ;;  %vm284_vm1 = vcmp.eq.s32.totalorder %v276_v10, 0  ;;  %s375_s25 = scalar_lea.sflag [#allocation4], %s848_s7  ;;  %s635_s26 = scalar_lea.vmem %s882_s6, 512 }
  0x5e   : > { %v278_v11 = vmax.f32 %v277_v8, %v513_v7  ;;  %vm291_vm2 = vcmp.eq.s32.totalorder %v276_v10, 1  ;;  %v285_v33 = vsel %vm284_vm1, %v269_v5, 0.0  ;;  %vm298_vm3 = vcmp.eq.s32.totalorder %v276_v10, 2  ;;  %p636_p8 = scmp.ne.s32.totalorder %s882_s6, %s635_s26  ;;  %s731_s12 = smov [#allocation7]  }
  0x5f   : > { %v347_v3 = vmul.u32 128, %v341_v1  ;;  %v351_v15 = vmul.f32 %v512_v6, %v312_v12  ;;  %v292_v34 = vsel %vm291_vm2, %v512_v6, 0.0  ;;  %v299_v36 = vsel %vm298_vm3, %v513_v7, 0.0  ;;  %s639_s28 = sshll.u32 %s731_s12, 4  ;;  %s640_s28 = int_to_ptr.vmem [resolvable:$false] %s639_s28 }
  0x60   : > { %v279_v14 = vmax.f32 %v278_v11, %v514_v9  ;;  %v293_v35 = vadd.f32 %v292_v34, %v285_v33  ;;  %vm305_vm4 = vcmp.eq.s32.totalorder %v276_v10, 3  ;;  %p637_p11 = pnand %p636_p8, %p800_p9  ;;  %s641_s3 = scalar_lea.vmem %s640_s28, 1024 }
  0x61   : > { %v348_v4 = vadd.s32 %v347_v3, %v343_v2  ;;  %v306_v38 = vsel %vm305_vm4, %v514_v9, 0.0  ;;  %p642_p2 = scmp.lt.s32.totalorder %s882_s6, %s640_s28  ;;  %p643_p3 = scmp.lt.s32.totalorder %s641_s3, %s635_s26 }
  0x62   : > { %v280_v17 = vsub.f32 %v269_v5, %v279_v14  ;;  %v287_v18 = vsub.f32 %v512_v6, %v279_v14  ;;  %v294_v19 = vsub.f32 %v513_v7, %v279_v14  ;;  %v301_v20 = vsub.f32 %v514_v9, %v279_v14  ;;  %p638_p12 = pneg %p637_p11 }
  0x63   : > { %vm349_vm0 = vcmp.lt.s32.totalorder %v348_v4, 256  ;;  %v300_v37 = vadd.f32 %v299_v36, %v293_v35  ;;  %p644_p4 = por %p643_p3, %p642_p2 }
  0x64   : > { %v353_v13 = vsel %vm349_vm0, %v512_v6, 0.0  ;;  %v354_v16 = vsel %vm349_vm0, %v312_v12, 0.0  ;;  %v352_v21 = vsel %vm349_vm0, %v351_v15, 0.0  ;;  %v281_v22 = vmul.f32 1.442695, %v280_v17 }
  0x65   : > { %524 = vst [vmem:[%s868_s21 + $0x10] sm:$0xff] %v353_v13  ;;  %v288_v23 = vmul.f32 1.442695, %v287_v18  ;;  %v295_v24 = vmul.f32 1.442695, %v294_v19  ;;  %526 = vst [vmem:[%s868_s21 + $0x18] sm:$0xff] %v354_v16  ;;  %v307_v40 = vadd.f32 %v306_v38, %v300_v37  ;;  %p645_p5 = pnand %p644_p4, %p638_p12 }
  0x66   : > { %v302_v25 = vmul.f32 1.442695, %v301_v20  ;;  %601 = vpow2.f32 %v281_v22  ;;  %522 = vst [vmem:[%s868_s21 + $0x8] sm:$0xff] %v352_v21 }
  0x67   : > { %603 = vpow2.f32 %v288_v23 }
  0x68   : > { %605 = vpow2.f32 %v295_v24 }
  0x69   : > { %607 = vpow2.f32 %v302_v25 }
  0x70   : > { %v602_v26 = vpop.eup %601 }
  0x71   : > { %v604_v27 = vpop.eup %603 }
  0x72   : > { %v606_v28 = vpop.eup %605  ;;  %v290_v29 = vadd.f32 %v604_v27, %v602_v26 }
  0x73   : > { %v608_v30 = vpop.eup %607 }
  0x74   : > { %v297_v31 = vadd.f32 %v606_v28, %v290_v29 }
  0x76   : > { %v304_v32 = vadd.f32 %v608_v30, %v297_v31 }
  0x78   : > { %609 = vlog2.f32 %v304_v32 }
  0x82   : > { %v610_v39 = vpop.eup %609 }
  0x83   : > { %v309_v41 = vmul.f32 0.6931472, %v610_v39 }
  0x85   : > { %v310_v42 = vadd.f32 %v309_v41, %v279_v14 }
  0x87   : > { %v311_v43 = vsub.f32 %v310_v42, %v307_v40 }
  0x89   : > { %v350_v44 = vsel %vm349_vm0, %v311_v43, 0.0 }
  0x8a   : > { %358 = vst [vmem:[%s868_s21] sm:$0xff] %v350_v44 }
  0x8b   : > { %648 = shalt.err (!%p645_p5)
}
  0x8c   : > { %s649_s30 = scalar_lea.hbm %s880_s20, 512  ;;  %s653_s27 = scalar_lea.hbm %s934_s2, 1024 }
  0x8d   : > { %p650_p6 = scmp.ne.s32.totalorder %s880_s20, %s649_s30  ;;  %p654_p13 = scmp.lt.u32.totalorder %s880_s20, %s934_s2 }
  0x8e   : > { %p655_p0 = scmp.lt.u32.totalorder %s653_s27, %s649_s30  ;;  %p657_p8 = scmp.lt.u32.totalorder %s649_s30, %s880_s20 }
  0x8f   : > { %p651_p7 = pnand %p650_p6, %p800_p9 }
  0x90   : > { %p656_p1 = por %p655_p0, %p654_p13 }
  0x91   : > { %p652_p10 = pneg %p651_p7 }
  0x92   : > { %p658_p11 = por %p657_p8, %p656_p1 }
  0x94   : > { %p659_p12 = pnand %p658_p11, %p652_p10 }
  0x96   : > { %662 = shalt.err (!%p659_p12)
}
  0x97   : > { %s732_s15 = smov 128   ;;  %s733_s21 = smov 8  }
  0x98   : > { %536 = dma.vmem_to_hbm [thread:$0]  (%p800_p9), %s882_s6, 512, %s880_s20, %s375_s25, %s732_s15, %s732_s15, %s733_s21  }
  0x99 PF: > { %s403_s5 = sand.u32 1, %s701_s9   ;;  %p940_p2 = scmp.ne.s32.totalorder %s939_s24, 0 }
  0x9a   : > { %p941_p3 = scmp.ge.s32.totalorder %s721_s14, 2  ;;  %s404_s16 = scalar_lea.sflag [#allocation4], %s403_s5 }
  0x9c   : > { %p539_p4 = pnand %p941_p3, %p940_p2 }
  0x9e   : > { %696 = dma.done.wait (!%p539_p4), %s404_s16, 512  }
  0x9f   : > { %698 = vsyncadd (!%p539_p4), %s404_s16, 4294966784  ;;  %s21_s14 = sadd.s32 1, %s721_s14   ;;  %s942_s9 = smov %s705_s10 }
  0xa0   : > { %p18_p5 = scmp.ge.s32.totalorder %s21_s14, 4   ;;  %s943_s10 = smov %s709_s11 }
  0xa1   : > { %s944_s11 = smov %s805_s23  ;;  %s945_s12 = smov %s717_s13 }
  0xa2   : > { %s946_s13 = smov %s948_s17  ;;  %20 = sbr.rel (!%p18_p5) target bundleno = 8 (0x8), region = 112 }
  0xa9   :  { %409 = vsyncpa [#allocation3], 1 }
  0xaa   :  { %411 = vsyncpa [#allocation3 + $0x1], 1 }
  0xab   :  { %412 = vsyncpa [#allocation6], 1 }
  0xac   :  { %414 = vsyncpa [#allocation6 + $0x1], 1 }
  0xad   :  { %415 = vsyncpa [#allocation4], 1 }
  0xae   :  { %417 = vsyncpa [#allocation4 + $0x1], 1 }

</bundles_post_ra>
